<compile_context>
chip_gen: v7x
topology: tpu7x:2x2x1
jax: 0.10.0
libtpu: 0.0.40
codegen_flags: <defaults>
</compile_context>

<pallas_src>
import jax
import jax.numpy as jnp
import numpy as np
from jax.experimental import pallas as pl
from jax.experimental.pallas import tpu as pltpu

FEATURES = 32            # `features` arg of Model_bilinear
EMB = 10                 # embedding_size
NUM_CLASSES = 2
SIGMA = 0.3
EC = EMB * NUM_CLASSES   # 20 (flattened e*C + c ordering everywhere)
OUT_W = FEATURES         # packed output width: z in cols [0,EC), y in [EC,EC+C)
NEG_INV = -1.0 / (2.0 * EMB * SIGMA * SIGMA)   # exp(sum * NEG_INV) == exp(mean(-d^2)/(2*s^2))

# --- param-slab row layout (all rows 32 lanes wide, chunks 8-row aligned) ----
ROW_W1 = 0      # rows   0:2   fc1 weight (2, 32)       (rows 2:8 are zero pad)
ROW_W2 = 8      # rows   8:40  fc2 weight (32, 32)
ROW_WF = 40     # rows  40:72  fused fc3+bilinear weight, data in cols 0:EC
ROW_SEL = 72    # rows  72:104 selection matrix -> per-class sums in cols EC:EC+C
ROW_B1 = 104    # fc1 bias
ROW_B2 = 105    # fc2 bias
ROW_BF = 106    # fused bias (b3 @ Wflat), cols 0:EC
ROW_EMB = 107   # m / N, cols 0:EC          (rows 108:112 are zero pad)
SLAB_ROWS = 112

# Selection matrix built as a static NumPy constant (no per-call scatter ops).
_SEL_OUT = np.zeros((FEATURES, FEATURES), np.float32)
for _e in range(EMB):
    for _c in range(NUM_CLASSES):
        _SEL_OUT[_e * NUM_CLASSES + _c, EC + _c] = 1.0


def duq_kernel(x_ref, p_ref, out_ref):
    x = x_ref[...]                                     # (TB, 2)
    w1 = p_ref[pl.ds(ROW_W1, 2), :]                    # (2, 32)
    w2 = p_ref[pl.ds(ROW_W2, FEATURES), :]             # (32, 32)
    wf = p_ref[pl.ds(ROW_WF, FEATURES), :]             # (32, 32), cols EC: are 0
    sel = p_ref[pl.ds(ROW_SEL, FEATURES), :]           # (32, 32)
    b1 = p_ref[pl.ds(ROW_B1, 1), :]                    # (1, 32)
    b2 = p_ref[pl.ds(ROW_B2, 1), :]
    bf = p_ref[pl.ds(ROW_BF, 1), :]
    emb = p_ref[pl.ds(ROW_EMB, 1), :]

    h = jnp.maximum(jnp.dot(x, w1, preferred_element_type=jnp.float32) + b1, 0.0)
    h = jnp.maximum(jnp.dot(h, w2, preferred_element_type=jnp.float32) + b2, 0.0)
    # fc3 folded into the flattened bilinear projection: z in cols 0:EC, 0 after.
    zf = jnp.dot(h, wf, preferred_element_type=jnp.float32) + bf
    diff = zf - emb
    sq = diff * diff                                   # cols EC: stay exactly 0
    # sum over the embedding axis, routed directly into cols EC:EC+C
    ys = jnp.dot(sq, sel, preferred_element_type=jnp.float32)
    y = jnp.exp(ys * NEG_INV)                          # single VPU mul feeding EUP exp

    # single lane-dense store: z in cols <EC, y_pred in cols EC:EC+C, 0 after
    col = jax.lax.broadcasted_iota(jnp.int32, zf.shape, 1)
    out_ref[...] = jnp.where(col < EC, zf,
                             jnp.where(col < EC + NUM_CLASSES, y, 0.0))


def pack_params(params):
    """One-time fold + pack of all module parameters into a (112, 32) slab."""
    w1, b1, w2, b2, w3, b3, W, m, N = params
    wflat = jnp.transpose(W.reshape(EC, FEATURES))           # (32, 20), col = e*C + c
    w_fused = jnp.dot(w3, wflat)                             # fold fc3 into projection
    b_fused = jnp.dot(b3.reshape(1, FEATURES), wflat)        # (1, 20)
    emb = (m / N[None, :]).reshape(1, EC)                    # (1, 20)

    pad_cols = FEATURES - EC
    w1_pad = jnp.concatenate(
        [w1, jnp.zeros((8 - w1.shape[0], FEATURES), jnp.float32)], axis=0)   # (8, 32)
    wf_pad = jnp.pad(w_fused, ((0, 0), (0, pad_cols)))                        # (32, 32)
    bias_chunk = jnp.concatenate([
        b1.reshape(1, FEATURES),
        b2.reshape(1, FEATURES),
        jnp.pad(b_fused, ((0, 0), (0, pad_cols))),
        jnp.pad(emb, ((0, 0), (0, pad_cols))),
        jnp.zeros((4, FEATURES), jnp.float32),
    ], axis=0)                                                                # (8, 32)

    slab = jnp.concatenate(
        [w1_pad, w2, wf_pad, jnp.asarray(_SEL_OUT), bias_chunk], axis=0)
    assert slab.shape == (SLAB_ROWS, FEATURES)
    return slab


def model_bilinear_forward(x, slab):
    B = x.shape[0]
    # batch tile: full batch for small B, 256-row blocks (mult. of 8) otherwise
    TB = B if B <= 256 else 256
    assert B % TB == 0, "batch must be a multiple of the batch tile"

    out = pl.pallas_call(
        duq_kernel,
        out_shape=jax.ShapeDtypeStruct((B, OUT_W), jnp.float32),
        grid=(B // TB,),
        in_specs=[pl.BlockSpec((TB, 2), lambda i: (i, 0)),
                  pl.BlockSpec((SLAB_ROWS, FEATURES), lambda i: (0, 0))],
        out_specs=pl.BlockSpec((TB, OUT_W), lambda i: (i, 0)),
        compiler_params=pltpu.CompilerParams(dimension_semantics=("parallel",)),
    )(x, slab)

    z = out[:, :EC].reshape(B, EMB, NUM_CLASSES)      # matches torch (B, 10, 2)
    y_pred = out[:, EC:EC + NUM_CLASSES]              # (B, 2)
    return z, y_pred


def init_params(key):
    ks = jax.random.split(key, 8)
    # nn.Linear-style weights stored as (in, out); deterministic synthetic init.
    w1 = jax.random.normal(ks[0], (2, FEATURES), jnp.float32) * 0.5
    b1 = jax.random.normal(ks[1], (FEATURES,), jnp.float32) * 0.1
    w2 = jax.random.normal(ks[2], (FEATURES, FEATURES), jnp.float32) * 0.2
    b2 = jax.random.normal(ks[3], (FEATURES,), jnp.float32) * 0.1
    w3 = jax.random.normal(ks[4], (FEATURES, FEATURES), jnp.float32) * 0.2
    b3 = jax.random.normal(ks[5], (FEATURES,), jnp.float32) * 0.1
    W = jax.random.normal(ks[6], (EMB, NUM_CLASSES, FEATURES), jnp.float32)
    N = jnp.ones((NUM_CLASSES,), jnp.float32) * 20.0
    m = jax.random.normal(ks[7], (EMB, NUM_CLASSES), jnp.float32) * N[None, :]
    return (w1, b1, w2, b2, w3, b3, W, m, N)


def reference_forward(x, params):
    w1, b1, w2, b2, w3, b3, W, m, N = params
    h = jax.nn.relu(x @ w1 + b1)
    h = jax.nn.relu(h @ w2 + b2)
    h = h @ w3 + b3
    z = jnp.einsum('ij,mnj->imn', h, W)
    emb = m / N[None, :]
    diff = z - emb[None]
    y = jnp.exp(jnp.mean(-diff ** 2, axis=1) / (2.0 * SIGMA ** 2))
    return z, y


# TODO(synk): update_embeddings (training-time EMA of N/m buffers) is stateful
# and outside forward(); not implemented as a kernel.

if __name__ == "__main__":
    key = jax.random.PRNGKey(0)
    pkey, xkey = jax.random.split(key)
    params = init_params(pkey)
    x = jax.random.normal(xkey, (8, 2), jnp.float32)          # batch=8, 2-D inputs

    slab = jax.block_until_ready(pack_params(params))         # one-time packing
    z, y_pred = jax.block_until_ready(model_bilinear_forward(x, slab))

    z_ref, y_ref = reference_forward(x, params)
    np.testing.assert_allclose(np.asarray(z), np.asarray(z_ref), rtol=2e-3, atol=2e-3)
    np.testing.assert_allclose(np.asarray(y_pred), np.asarray(y_ref), rtol=2e-3, atol=2e-3)

    print("KERNEL_OK")
</pallas_src>

<mosaic_0001>
module attributes {stable_mosaic.version = 11 : i64} {
  func.func @duq_kernel(%arg0: i32, %arg1: memref<8x2xf32, #tpu.memory_space<vmem>>, %arg2: memref<112x32xf32, #tpu.memory_space<vmem>>, %arg3: memref<8x32xf32, #tpu.memory_space<vmem>>) attributes {dimension_semantics = [#tpu.dimension_semantics<parallel>], iteration_bounds = array<i64: 1>, scalar_prefetch = 0 : i64, scratch_operands = 0 : i64, tpu.core_type = #tpu.core_type<tc>, window_params = [{transform_indices = @transform_0, window_bounds = array<i64: 8, 2>}, {pipeline_mode = #tpu.pipeline_mode<synchronous>, transform_indices = @transform_1, window_bounds = array<i64: 112, 32>}, {transform_indices = @transform_2, window_bounds = array<i64: 8, 32>}]} {
    %c0 = arith.constant 0 : index
    %c0_0 = arith.constant 0 : index
    %0 = vector.load %arg1[%c0, %c0_0] : memref<8x2xf32, #tpu.memory_space<vmem>>, vector<8x2xf32>
    %c0_1 = arith.constant 0 : index
    %c0_2 = arith.constant 0 : index
    %1 = vector.load %arg2[%c0_1, %c0_2] : memref<112x32xf32, #tpu.memory_space<vmem>>, vector<2x32xf32>
    %c8 = arith.constant 8 : index
    %c0_3 = arith.constant 0 : index
    %2 = vector.load %arg2[%c8, %c0_3] : memref<112x32xf32, #tpu.memory_space<vmem>>, vector<32x32xf32>
    %c40 = arith.constant 40 : index
    %c0_4 = arith.constant 0 : index
    %3 = vector.load %arg2[%c40, %c0_4] : memref<112x32xf32, #tpu.memory_space<vmem>>, vector<32x32xf32>
    %c72 = arith.constant 72 : index
    %c0_5 = arith.constant 0 : index
    %4 = vector.load %arg2[%c72, %c0_5] : memref<112x32xf32, #tpu.memory_space<vmem>>, vector<32x32xf32>
    %c104 = arith.constant 104 : index
    %c0_6 = arith.constant 0 : index
    %5 = vector.load %arg2[%c104, %c0_6] : memref<112x32xf32, #tpu.memory_space<vmem>>, vector<1x32xf32>
    %c105 = arith.constant 105 : index
    %c0_7 = arith.constant 0 : index
    %6 = vector.load %arg2[%c105, %c0_7] : memref<112x32xf32, #tpu.memory_space<vmem>>, vector<1x32xf32>
    %c106 = arith.constant 106 : index
    %c0_8 = arith.constant 0 : index
    %7 = vector.load %arg2[%c106, %c0_8] : memref<112x32xf32, #tpu.memory_space<vmem>>, vector<1x32xf32>
    %c107 = arith.constant 107 : index
    %c0_9 = arith.constant 0 : index
    %8 = vector.load %arg2[%c107, %c0_9] : memref<112x32xf32, #tpu.memory_space<vmem>>, vector<1x32xf32>
    %cst = arith.constant dense<0.000000e+00> : vector<8x32xf32>
    %9 = tpu.matmul %0, %1, %cst {dimension_numbers = #tpu.dot_dimension_numbers<[1], [0], [0], [1], [0, 0, 1, 1], [], []>} : vector<8x2xf32>, vector<2x32xf32>, vector<8x32xf32> -> vector<8x32xf32>
    %10 = vector.broadcast %5 : vector<1x32xf32> to vector<8x32xf32>
    %11 = arith.addf %9, %10 : vector<8x32xf32>
    %cst_10 = arith.constant 0.000000e+00 : f32
    %12 = vector.broadcast %cst_10 : f32 to vector<8x32xf32>
    %13 = arith.maximumf %11, %12 : vector<8x32xf32>
    %cst_11 = arith.constant dense<0.000000e+00> : vector<8x32xf32>
    %14 = tpu.matmul %13, %2, %cst_11 {dimension_numbers = #tpu.dot_dimension_numbers<[1], [0], [0], [1], [0, 0, 1, 1], [], []>} : vector<8x32xf32>, vector<32x32xf32>, vector<8x32xf32> -> vector<8x32xf32>
    %15 = vector.broadcast %6 : vector<1x32xf32> to vector<8x32xf32>
    %16 = arith.addf %14, %15 : vector<8x32xf32>
    %cst_12 = arith.constant 0.000000e+00 : f32
    %17 = vector.broadcast %cst_12 : f32 to vector<8x32xf32>
    %18 = arith.maximumf %16, %17 : vector<8x32xf32>
    %cst_13 = arith.constant dense<0.000000e+00> : vector<8x32xf32>
    %19 = tpu.matmul %18, %3, %cst_13 {dimension_numbers = #tpu.dot_dimension_numbers<[1], [0], [0], [1], [0, 0, 1, 1], [], []>} : vector<8x32xf32>, vector<32x32xf32>, vector<8x32xf32> -> vector<8x32xf32>
    %20 = vector.broadcast %7 : vector<1x32xf32> to vector<8x32xf32>
    %21 = arith.addf %19, %20 : vector<8x32xf32>
    %22 = vector.broadcast %8 : vector<1x32xf32> to vector<8x32xf32>
    %23 = arith.subf %21, %22 : vector<8x32xf32>
    %24 = arith.mulf %23, %23 : vector<8x32xf32>
    %cst_14 = arith.constant dense<0.000000e+00> : vector<8x32xf32>
    %25 = tpu.matmul %24, %4, %cst_14 {dimension_numbers = #tpu.dot_dimension_numbers<[1], [0], [0], [1], [0, 0, 1, 1], [], []>} : vector<8x32xf32>, vector<32x32xf32>, vector<8x32xf32> -> vector<8x32xf32>
    %cst_15 = arith.constant -0.555555582 : f32
    %26 = vector.broadcast %cst_15 : f32 to vector<8x32xf32>
    %27 = arith.mulf %25, %26 : vector<8x32xf32>
    %28 = math.exp %27 : vector<8x32xf32>
    %29 = tpu.iota {dimensions = array<i32: 1>} : vector<8x32xi32>
    %c20_i32 = arith.constant 20 : i32
    %30 = vector.broadcast %c20_i32 : i32 to vector<8x32xi32>
    %31 = arith.cmpi slt, %29, %30 : vector<8x32xi32>
    %c22_i32 = arith.constant 22 : i32
    %32 = vector.broadcast %c22_i32 : i32 to vector<8x32xi32>
    %33 = arith.cmpi slt, %29, %32 : vector<8x32xi32>
    %cst_16 = arith.constant 0.000000e+00 : f32
    %34 = vector.broadcast %cst_16 : f32 to vector<8x32xf32>
    %35 = arith.select %33, %28, %34 : vector<8x32xi1>, vector<8x32xf32>
    %36 = arith.select %31, %21, %35 : vector<8x32xi1>, vector<8x32xf32>
    %c0_17 = arith.constant 0 : index
    %c0_18 = arith.constant 0 : index
    %37 = vector.load %arg3[%c0_17, %c0_18] : memref<8x32xf32, #tpu.memory_space<vmem>>, vector<8x32xf32>
    tpu.vector_store %arg3[%c0_17, %c0_18], %36 {strides = array<i32>} : memref<8x32xf32, #tpu.memory_space<vmem>>, vector<8x32xf32>,
    return
  }
  func.func @transform_0(%arg0: i32) -> (i32, i32) {
    %c0_i32 = arith.constant 0 : i32
    %c0_i32_0 = arith.constant 0 : i32
    return %arg0, %c0_i32 : i32, i32
  }
  func.func @transform_1(%arg0: i32) -> (i32, i32) {
    %c0_i32 = arith.constant 0 : i32
    %c0_i32_0 = arith.constant 0 : i32
    %c0_i32_1 = arith.constant 0 : i32
    return %c0_i32, %c0_i32_0 : i32, i32
  }
  func.func @transform_2(%arg0: i32) -> (i32, i32) {
    %c0_i32 = arith.constant 0 : i32
    %c0_i32_0 = arith.constant 0 : i32
    return %arg0, %c0_i32 : i32, i32
  }
}

</mosaic_0001>

<bundles_post_ra>
// kernel: tpu_custom_call.1
= control target key start
LH: loop header
LB: loop body
LE: loop exit
PB: predicated region body
PF: predicated region fallthrough
CT: control target
= control target key end

     0   :  { %vm38_vm0 = vcmask 1041408   ;;  %v484_v2 = vmov 0.0   ;;  %vm485_vm1 = vmmov 0   ;;  %vm34_vm2 = vcmask 15360   ;;  %s577_s0 = inlined_call_operand.vmem [shape: f32[8,2], index: 0, kind: input, shape index: {}]   ;;  %s578_s1 = inlined_call_operand.vmem [shape: f32[112,32], index: 1, kind: input, shape index: {}]   ;;  %s579_s2 = inlined_call_operand.hbm [shape: f32[8,32], index: 2, kind: output, shape index: {}]  }
   0x1   :  { %v13_v0 = vld [vmem:[%s578_s1] sm:$0x3]  ;;  %398 = vmatprep.subr.mxu0 %v484_v2  ;;  %400 = vmatprep.mubr.msk.f32.mxu0 %vm485_vm1, %v484_v2  ;;  %v14_v3 = vld [vmem:[%s578_s1 + $0x8] sm:$0xff]  ;;  %v15_v4 = vld [vmem:[%s578_s1 + $0x10] sm:$0xff]  ;;  %v486_v5 = vmov 0.0|0.0  }
   0x2   :  { %v12_v1 = vld [vmem:[%s577_s0] sm:$0xff]  ;;  %399 = vmatpush3.msk.msra.mxu0 %vm38_vm0, %v13_v0  ;;  %436 = vmatprep.subr.bf16.mxu1 %v486_v5  ;;  %v437_v6 = vpack.c.bf16 %v15_v4, %v14_v3 }
   0x3   :  { %7 = vsyncpa [#allocation3], 0  ;;  %401 = vmatmul.mubr.msk.f32.vlgmr.msra.gmra.mrb[0].mxu0 %vm34_vm2, %v12_v1  ;;  %411 = vmatprep.mubr.msk.f32.mxu1 %vm485_vm1, %v484_v2  ;;  %v16_v7 = vld [vmem:[%s578_s1 + $0x18] sm:$0xff]  ;;  %v17_v8 = vld [vmem:[%s578_s1 + $0x20] sm:$0xff]  ;;  %vm117_vm3 = vcmask 261120   ;;  %v351_v43 = vlaneseq  ;;  %s487_s16 = smov [#allocation2]  }
   0x4   :  { %438 = vmatpush3.bf16.msra.mxu1 %v437_v6  ;;  %442 = vmatprep.subr.bf16.mxu0 %v486_v5  ;;  %v440_v9 = vpack.c.bf16 %v17_v8, %v16_v7  ;;  %v18_v10 = vld [vmem:[%s578_s1 + $0x28] sm:$0xff]  ;;  %v19_v11 = vld [vmem:[%s578_s1 + $0x30] sm:$0xff]  ;;  %v20_v18 = vld [vmem:[%s578_s1 + $0x38] sm:$0xff]  ;;  %s364_s0 = sshll.u32 %s487_s16, 4  ;;  %s365_s0 = int_to_ptr.vmem [resolvable:$true] %s364_s0 }
   0x5   :  { %439 = vmatprep.subr.bf16.mxu1 %v486_v5  ;;  %422 = vmatprep.mubr.msk.f32.mxu0 %vm485_vm1, %v484_v2  ;;  %v443_v12 = vpack.c.bf16 %v19_v11, %v18_v10  ;;  %v372_v13 = vld [vmem:[%s578_s1 + $0x68] ss:$0 sm:$0xff]  ;;  %v21_v19 = vld [vmem:[%s578_s1 + $0x40] sm:$0xff]  ;;  %v375_v21 = vld [vmem:[%s578_s1 + $0x69] ss:$0 sm:$0xff]  ;;  %v352_v44 = vand.u32 127, %v351_v43  ;;  %p465_p1 = scmp.lt.s32.totalorder %s365_s0, %s365_s0 }
   0x6   :  { %v446_v20 = vpack.c.bf16 %v21_v19, %v20_v18  ;;  %v22_v26 = vld [vmem:[%s578_s1 + $0x48] sm:$0xff]  ;;  %v23_v27 = vld [vmem:[%s578_s1 + $0x50] sm:$0xff]  ;;  %v24_v29 = vld [vmem:[%s578_s1 + $0x58] sm:$0xff] }
   0x7   :  { %444 = vmatpush3.bf16.msra.mxu0 %v443_v12  ;;  %v449_v28 = vpack.c.bf16 %v23_v27, %v22_v26  ;;  %v25_v30 = vld [vmem:[%s578_s1 + $0x60] sm:$0xff]  ;;  %v377_v32 = vld [vmem:[%s578_s1 + $0x6a] ss:$0 sm:$0xff]  ;;  %v379_v33 = vld [vmem:[%s578_s1 + $0x6b] ss:$0 sm:$0xff]  ;;  %vm354_vm4 = vcmp.lt.s32.totalorder %v352_v44, 22 }
   0x8   :  { %441 = vmatpush3.bf16.msra.mxu1 %v440_v9  ;;  %445 = vmatprep.subr.bf16.mxu0 %v486_v5  ;;  %v452_v31 = vpack.c.bf16 %v25_v30, %v24_v29  ;;  %vm353_vm5 = vcmp.lt.s32.totalorder %v352_v44, 20  ;;  %s460_s1 = scalar_lea.vmem %s365_s0, 128 }
   0x9   :  { %448 = vmatprep.subr.bf16.mxu1 %v486_v5  ;;  %p461_p0 = scmp.ne.s32.totalorder %s365_s0, %s460_s1  ;;  %p466_p2 = scmp.lt.s32.totalorder %s460_s1, %s460_s1 }
   0xb   :  { %447 = vmatpush3.bf16.msra.mxu0 %v446_v20  ;;  %p467_p3 = por %p466_p2, %p465_p1 }
   0xd   :  { %p468_p4 = pnand %p467_p3, %p461_p0 }
  0xd6   :  { %v108_v14 = vpop.f32.mrb[0].mxu0 }
  0xd7   :  { %v109_v15 = vadd.f32 %v372_v13, %v108_v14  ;;  %v402_v16 = vpop.f32.mrb[1].mxu0 }
  0xd9   :  { %v112_v17 = vmax.f32 %v109_v15, 0.0 }
  0xdb   :  { %412 = vmatmul.mubr.msk.f32.vlgmr.msra.gmra.mrb[0].mxu1 %vm117_vm3, %v112_v17 }
  0xdc   :  { %433 = vmatprep.mubr.msk.f32.mxu1 %vm485_vm1, %v484_v2  ;;  %450 = vmatpush3.bf16.msra.mxu1 %v449_v28 }
  0xdd   :  { %451 = vmatprep.subr.bf16.mxu1 %v486_v5 }
  0xe0   :  { %453 = vmatpush3.bf16.msra.mxu1 %v452_v31 }
 0x1ae   :  { %v187_v22 = vpop.f32.mrb[0].mxu1 }
 0x1af   :  { %v188_v23 = vadd.f32 %v375_v21, %v187_v22  ;;  %v413_v24 = vpop.f32.mrb[1].mxu1 }
 0x1b1   :  { %v191_v25 = vmax.f32 %v188_v23, 0.0 }
 0x1b3   :  { %423 = vmatmul.mubr.msk.f32.vlgmr.msra.gmra.mrb[2].mxu0 %vm117_vm3, %v191_v25 }
 0x286   :  { %v265_v34 = vpop.f32.mrb[2].mxu0 }
 0x287   :  { %v266_v35 = vadd.f32 %v377_v32, %v265_v34  ;;  %v424_v36 = vpop.f32.mrb[3].mxu0 }
 0x289   :  { %v273_v37 = vsub.f32 %v266_v35, %v379_v33 }
 0x28b   :  { %v274_v38 = vmul.f32 %v273_v37, %v273_v37 }
 0x28d   :  { %434 = vmatmul.mubr.msk.f32.vlgmr.msra.gmra.mrb[2].mxu1 %vm117_vm3, %v274_v38 }
 0x360   :  { %v344_v39 = vpop.f32.mrb[2].mxu1 }
 0x361   :  { %v348_v40 = vmul.f32 -0.5555556, %v344_v39  ;;  %v435_v41 = vpop.f32.mrb[3].mxu1 }
 0x363   :  { %v349_v42 = vmul.f32 1.442695, %v348_v40 }
 0x365   :  { %458 = vpow2.f32 %v349_v42 }
 0x36f   :  { %v459_v45 = vpop.eup %458 }
 0x370   :  { %v355_v46 = vsel %vm354_vm4, %v459_v45, 0.0 }
 0x371   :  { %v356_v47 = vsel %vm353_vm5, %v266_v35, %v355_v46 }
 0x372   :  { %357 = vst.msk [vmem:[#allocation2] sm:$0xff] %vm117_vm3, %v356_v47 }
 0x373   :  { %471 = shalt.err (!%p468_p4)
}
 0x374   :  { %s472_s19 = scalar_lea.hbm %s579_s2, 128 }
 0x375   :  { %p473_p5 = scmp.ne.s32.totalorder %s579_s2, %s472_s19  ;;  %p476_p6 = scmp.lt.u32.totalorder %s472_s19, %s579_s2 }
 0x377   :  { %p478_p7 = pnand %p476_p6, %p473_p5 }
 0x379   :  { %481 = shalt.err (!%p478_p7)
}
 0x37a   :  { %367 = dma.vmem_to_hbm [thread:$0]  %s365_s0, 128, %s579_s2, [#allocation3]  }
 0x37b   :  { %482 = dma.done.wait [#allocation3], 128  }
 0x37c   :  { %483 = vsyncadd [#allocation3], 4294967168 }
 0x37d   :  { %371 = vsyncpa [#allocation3], 1 }

</bundles_post_ra>
